<compile_context>
chip_gen: v5e
topology: v5e:2x2
jax: 0.10.0
libtpu: 0.0.40
codegen_flags: <defaults>
</compile_context>

<pallas_src>
import math

import numpy as np
import jax
import jax.numpy as jnp
from jax import lax
from jax.experimental import pallas as pl
from jax.experimental.pallas import tpu as pltpu


# ----------------------------------------------------------------------------
# Static coefficient computation (mirrors ChebyFilter.plateau / cheby / fit)
# ----------------------------------------------------------------------------
def _plateau(order, flatness):
    x = np.arange(order + 1, dtype=np.float64)
    x = np.round(np.cos((order - x) / order * math.pi), 3)
    out = np.zeros_like(x)
    neg = x < 0
    out[neg] = np.power(-x[neg], flatness) * 0.5 + 0.5
    out[~neg] = np.power(x[~neg], flatness) * -0.5 + 0.5
    return np.round(out, 3)


def _cheby_np(x, init, order):
    if order == 0:
        return init[None]
    out = [init, x * init]
    for _ in range(2, order + 1):
        out.append(x * out[-1] * 2 - out[-2])
    return np.stack(out)


def cheby_coeffs(order, flatness):
    nodes = np.arange(1, order + 2, dtype=np.float64)
    nodes = np.cos((order + 1 + 0.5 - nodes) / (order + 1) * math.pi)
    target = _plateau(order, flatness)
    coeffs = _cheby_np(nodes, target, order).sum(axis=1) * (2.0 / (order + 1))
    coeffs[0] /= 2.0
    return coeffs.astype(np.float32)


# ----------------------------------------------------------------------------
# Normalized interaction matrix (dense analogue of get_norm_inter_torch)
# ----------------------------------------------------------------------------
def get_norm_inter(inter_dense):
    user_deg = jnp.maximum(inter_dense.sum(axis=1), 1.0)
    item_deg = jnp.maximum(inter_dense.sum(axis=0), 1.0)
    u_inv = user_deg ** -0.5
    i_inv = item_deg ** -0.5
    return inter_dense * u_inv[:, None] * i_inv[None, :]


def _round_up(x, m):
    return ((x + m - 1) // m) * m


# ----------------------------------------------------------------------------
# Pallas kernel
#   grid = (order, nu); u (inner) sweeps R tiles, kk (outer) walks the
#   Chebyshev recurrence.  Refs:
#     coef_ref : SMEM  [order+1]        f32  (whole array, scalar-indexed)
#     sig_ref  : VMEM  [B, I]           f32  (resident: block index constant)
#     r_ref    : VMEM  [tu, I]          bf16 (streamed / resident slab of R)
#     out_ref  : VMEM  [B, I]           f32  (resident accumulator of the
#                                             coefficient-weighted sum)
#   scratch (persist across grid steps):
#     t_a, t_b : VMEM [B, I] f32  ping-pong Chebyshev state (T_{k-1}/T_{k-2})
#     x_bf     : VMEM [B, I] bf16 shadow of T_{k-1} (matmul LHS, cast once/step)
#     z        : VMEM [B, I] f32  partial z = (T_{k-1} R^T) R
# ----------------------------------------------------------------------------
def make_cheby_kernel(compute_dtype):
    def kernel(coef_ref, sig_ref, r_ref, out_ref, t_a, t_b, x_bf, z):
        kk = pl.program_id(0)            # Chebyshev step: computes T_{kk+1}
        u = pl.program_id(1)             # R tile index along the user axis
        last_u = pl.num_programs(1) - 1

        @pl.when(jnp.logical_and(kk == 0, u == 0))
        def _init():
            x0 = sig_ref[...]            # T_0 = signal (already in [B, I])
            t_a[...] = x0                # T_0 lives in t_a (kk even => prev = t_a)
            t_b[...] = x0                # placeholder T_{-1}; blended away at kk==0
            x_bf[...] = x0.astype(compute_dtype)
            out_ref[...] = coef_ref[0] * x0

        # Fused streaming: this R slab feeds BOTH matmuls of the Laplacian, so
        # R is read from HBM at most once per Chebyshev step (and only once for
        # the whole kernel when it is VMEM-resident, nu == 1).
        r_t = r_ref[...]                                   # bf16 [tu, I]
        xb = x_bf[...]                                     # bf16 [B, I] shadow
        # y_t = T_{k-1} @ R_t^T  (contract item axis; no materialized R^T)
        y_t = lax.dot_general(xb, r_t, (((1,), (1,)), ((), ())),
                              preferred_element_type=jnp.float32)   # [B, tu]
        # partial z contribution:  y_t @ R_t
        part = lax.dot_general(y_t.astype(compute_dtype), r_t,
                               (((1,), (0,)), ((), ())),
                               preferred_element_type=jnp.float32)  # [B, I]

        @pl.when(u == 0)
        def _first_tile():
            z[...] = part                # first tile: plain store (no zero-fill)

        @pl.when(u != 0)
        def _other_tiles():
            z[...] += part

        def finish(t_prev, t_prev2):
            # t_prev holds T_{kk}; t_prev2 holds T_{kk-1} (freed for T_{kk+1}).
            lap_x = t_prev[...] - 2.0 * z[...]             # L(T_{k-1})
            # kk == 0:  T_1 = L(T_0)         (first = 1)
            # kk  > 0:  T_k = 2 L(T_{k-1}) - T_{k-2}
            first = (kk == 0).astype(jnp.float32)
            t_new = (2.0 - first) * lap_x - (1.0 - first) * t_prev2[...]
            out_ref[...] += coef_ref[kk + 1] * t_new

            @pl.when(kk + 1 < pl.num_programs(0))
            def _carry():
                t_prev2[...] = t_new                       # ping-pong: overwrite T_{k-2} slot
                x_bf[...] = t_new.astype(compute_dtype)    # refresh bf16 shadow once/step

        @pl.when(jnp.logical_and(u == last_u, kk % 2 == 0))
        def _finish_even():
            finish(t_a, t_b)

        @pl.when(jnp.logical_and(u == last_u, kk % 2 == 1))
        def _finish_odd():
            finish(t_b, t_a)

    return kernel


def cheby_filter_forward(norm_inter, signal, coeffs, order,
                         *, compute_dtype=jnp.bfloat16):
    """ChebyFilter.forward.  norm_inter: [U, I] f32, signal: [B, I] -> [B, I] f32.

    For best MXU utilization, batch requests so B is large (>=128/256); the
    kernel itself is memory-bound at small B.  If U >> I, precompute the Gram
    matrix G = R^T R at fit time and use lap(x) = x - 2 x @ G (single matmul
    per step) — not done here since the demo has U < I.
    """
    U, I = norm_inter.shape
    B = signal.shape[0]
    coeffs = jnp.asarray(coeffs, jnp.float32)

    if order == 0:
        # Degenerate case: no Laplacian applications, just a scalar scale.
        return coeffs[0] * signal.astype(jnp.float32)

    # TPU-friendly padding: items -> multiple of 128 (lane-dense), batch -> x16
    # (bf16 sublane packing), users -> multiple of the MXU dimension so y_t is
    # lane-dense and the contraction uses full MXU passes.  Zero padding is
    # exact (padded rows/cols of R are zero and padded signal entries stay 0).
    MXU = 256
    B_pad = _round_up(B, 16)
    I_pad = _round_up(I, 128)
    U_pad_min = _round_up(U, MXU)

    # Per-generation VMEM budget (v5e/v6e: 128 MiB, v7x: 64 MiB physical).
    try:
        vmem_cap = int(pltpu.get_tpu_info().vmem_capacity_bytes)
    except Exception:
        vmem_cap = 64 * 1024 * 1024           # conservative (v7x) fallback
    vmem_budget = int(vmem_cap * 0.85)

    # Resident VMEM bytes: ping-pong T (2 x f32) + bf16 shadow + z (f32)
    # + output block + signal block (both conservatively counted double-buffered).
    state_bytes = B_pad * I_pad * (2 * 4 + 2 + 4) + 2 * (2 * B_pad * I_pad * 4)
    # TODO(synk): for catalogs where this state alone exceeds the VMEM budget
    # (large B*I, especially on v7x), add a batch-tile grid axis.

    r_resident_bytes = 2 * U_pad_min * I_pad * 2   # Pallas double-buffers the slab
    if state_bytes + r_resident_bytes <= vmem_budget:
        # Whole padded bf16 R fits: one slab, constant block index across kk
        # => DMA'd from HBM exactly once for the entire kernel.
        tu, U_pad, nu = U_pad_min, U_pad_min, 1
    else:
        slab_budget = max(vmem_budget - state_bytes, 4 * MXU * I_pad)
        tu = (slab_budget // (4 * I_pad)) // MXU * MXU   # 2 bufs * tu * I * 2B
        tu = int(max(MXU, min(tu, U_pad_min)))
        U_pad = _round_up(U, tu)
        nu = U_pad // tu

    r = jnp.zeros((U_pad, I_pad), compute_dtype)
    r = r.at[:U, :I].set(norm_inter.astype(compute_dtype))
    sig = jnp.zeros((B_pad, I_pad), jnp.float32)
    sig = sig.at[:B, :I].set(signal.astype(jnp.float32))
    # TODO(synk): per-generation R narrowing (int8 on v5e/v6e, fp8-e4m3 on v7x)
    # would halve R HBM traffic further; kept at bf16 to preserve tolerances.

    if nu > 1:
        # Serpentine u sweep: the last slab of step kk equals the first slab of
        # step kk+1, so Pallas skips one slab DMA per Chebyshev step.
        def r_map(kk, u):
            return (jnp.where(kk % 2 == 0, u, nu - 1 - u), 0)
    else:
        def r_map(kk, u):
            return (0, 0)

    vmem_limit = int(vmem_cap * 0.9)

    out = pl.pallas_call(
        make_cheby_kernel(compute_dtype),
        out_shape=jax.ShapeDtypeStruct((B_pad, I_pad), jnp.float32),
        grid=(order, nu),
        in_specs=[
            pl.BlockSpec(memory_space=pltpu.MemorySpace.SMEM),       # coeffs
            pl.BlockSpec((B_pad, I_pad), lambda kk, u: (0, 0)),      # signal
            pl.BlockSpec((tu, I_pad), r_map),                        # R slab
        ],
        out_specs=pl.BlockSpec((B_pad, I_pad), lambda kk, u: (0, 0)),
        scratch_shapes=[
            pltpu.VMEM((B_pad, I_pad), jnp.float32),   # t_a (ping-pong state)
            pltpu.VMEM((B_pad, I_pad), jnp.float32),   # t_b (ping-pong state)
            pltpu.VMEM((B_pad, I_pad), compute_dtype), # bf16 shadow of T_{k-1}
            pltpu.VMEM((B_pad, I_pad), jnp.float32),   # partial z = (xR^T)R
        ],
        compiler_params=pltpu.CompilerParams(
            dimension_semantics=("arbitrary", "arbitrary"),
            vmem_limit_bytes=vmem_limit),
    )(coeffs, sig, r)

    return out[:B, :I]


# ----------------------------------------------------------------------------
# Pure-JAX references
# ----------------------------------------------------------------------------
def reference_forward(norm_inter, signal, coeffs, order):
    """Exact f32 module semantics (signal.T, Laplacian recurrence, einsum)."""
    hi = jax.lax.Precision.HIGHEST
    x = signal.T.astype(jnp.float32)

    def lap(v):
        y = jnp.matmul(norm_inter, v, precision=hi)
        return v - 2.0 * jnp.matmul(norm_inter.T, y, precision=hi)

    bases = [x]
    if order >= 1:
        bases.append(lap(x))
        for _ in range(2, order + 1):
            bases.append(2.0 * lap(bases[-1]) - bases[-2])
    bases = jnp.stack(bases)
    return jnp.einsum('K,KNB->BN', jnp.asarray(coeffs, jnp.float32), bases,
                      precision=hi)


def reference_forward_matched(norm_inter, signal, coeffs, order,
                              compute_dtype=jnp.bfloat16):
    """Same math with the kernel's exact mixed precision (bf16 operands,
    f32 accumulation), kept in the [B, I] layout."""
    r = norm_inter.astype(jnp.bfloat16).astype(compute_dtype)
    x = signal.astype(jnp.float32)

    def lap(v):
        y = lax.dot_general(v.astype(compute_dtype), r, (((1,), (1,)), ((), ())),
                            preferred_element_type=jnp.float32)
        z = lax.dot_general(y.astype(compute_dtype), r, (((1,), (0,)), ((), ())),
                            preferred_element_type=jnp.float32)
        return v - 2.0 * z

    bases = [x]
    if order >= 1:
        bases.append(lap(x))
        for _ in range(2, order + 1):
            bases.append(2.0 * lap(bases[-1]) - bases[-2])
    out = jnp.zeros_like(x)
    for c, b in zip(np.asarray(coeffs, np.float32), bases):
        out = out + jnp.float32(c) * b
    return out


if __name__ == "__main__":
    ORDER = 4
    FLATNESS = 2
    NUM_USERS = 64
    NUM_ITEMS = 128
    BATCH = 16

    key = jax.random.PRNGKey(0)
    k_inter, k_sig = jax.random.split(key)

    # Synthetic binary interaction matrix [U, I] and its symmetric normalization.
    inter = (jax.random.uniform(k_inter, (NUM_USERS, NUM_ITEMS)) < 0.1).astype(jnp.float32)
    norm_inter = get_norm_inter(inter)

    # Input signal: batch of user rows over the item axis, [B, N_items].
    signal = jax.random.normal(k_sig, (BATCH, NUM_ITEMS), dtype=jnp.float32)

    coeffs = cheby_coeffs(ORDER, FLATNESS)

    out = jax.block_until_ready(cheby_filter_forward(norm_inter, signal, coeffs, ORDER))

    # 1) Tight check against a reference that applies the identical mixed
    #    precision (bf16 MXU operands, f32 accumulation): validates the kernel.
    ref_matched = jax.block_until_ready(
        reference_forward_matched(norm_inter, signal, coeffs, ORDER))
    np.testing.assert_allclose(np.asarray(out), np.asarray(ref_matched),
                               rtol=2e-3, atol=2e-3)

    # 2) Sanity check against the exact f32 module semantics: bounds the total
    #    effect of bf16 operand rounding across `order` Laplacian applications.
    ref_f32 = jax.block_until_ready(reference_forward(norm_inter, signal, coeffs, ORDER))
    num = np.linalg.norm(np.asarray(out) - np.asarray(ref_f32))
    den = max(np.linalg.norm(np.asarray(ref_f32)), 1e-12)
    assert num / den < 5e-2, f"bf16 kernel deviates {num / den:.3e} from f32 reference"

    print("KERNEL_OK")
</pallas_src>

<mosaic_0001>
module attributes {stable_mosaic.version = 11 : i64} {
  func.func @kernel(%arg0: i32, %arg1: i32, %arg2: memref<5xf32, #tpu.memory_space<smem>>, %arg3: memref<16x128xf32, #tpu.memory_space<vmem>>, %arg4: memref<256x128xbf16, #tpu.memory_space<vmem>>, %arg5: memref<16x128xf32, #tpu.memory_space<vmem>>, %arg6: memref<16x128xf32, #tpu.memory_space<vmem>>, %arg7: memref<16x128xf32, #tpu.memory_space<vmem>>, %arg8: memref<16x128xbf16, #tpu.memory_space<vmem>>, %arg9: memref<16x128xf32, #tpu.memory_space<vmem>>) attributes {dimension_semantics = [#tpu.dimension_semantics<arbitrary>, #tpu.dimension_semantics<arbitrary>], iteration_bounds = array<i64: 4, 1>, scalar_prefetch = 0 : i64, scratch_operands = 4 : i64, tpu.core_type = #tpu.core_type<tc>, window_params = [{transform_indices = @transform_0, window_bounds = array<i64: 5>}, {pipeline_mode = #tpu.pipeline_mode<synchronous>, transform_indices = @transform_1, window_bounds = array<i64: 16, 128>}, {pipeline_mode = #tpu.pipeline_mode<synchronous>, transform_indices = @transform_2, window_bounds = array<i64: 256, 128>}, {pipeline_mode = #tpu.pipeline_mode<synchronous>, transform_indices = @transform_3, window_bounds = array<i64: 16, 128>}]} {
    %c0_i32 = arith.constant 0 : i32
    %0 = arith.cmpi eq, %arg0, %c0_i32 : i32
    %c0_i32_0 = arith.constant 0 : i32
    %1 = arith.cmpi eq, %arg1, %c0_i32_0 : i32
    %2 = arith.andi %0, %1 : i1
    %3 = arith.extui %2 : i1 to i32
    %c0_i32_1 = arith.constant 0 : i32
    %4 = arith.cmpi ne, %3, %c0_i32_1 : i32
    scf.if %4 {
      %c0_26 = arith.constant 0 : index
      %c0_27 = arith.constant 0 : index
      %46 = vector.load %arg3[%c0_26, %c0_27] : memref<16x128xf32, #tpu.memory_space<vmem>>, vector<16x128xf32>
      %c0_28 = arith.constant 0 : index
      %c0_29 = arith.constant 0 : index
      %47 = vector.load %arg6[%c0_28, %c0_29] : memref<16x128xf32, #tpu.memory_space<vmem>>, vector<16x128xf32>
      tpu.vector_store %arg6[%c0_28, %c0_29], %46 {strides = array<i32>} : memref<16x128xf32, #tpu.memory_space<vmem>>, vector<16x128xf32>,
      %c0_30 = arith.constant 0 : index
      %c0_31 = arith.constant 0 : index
      %48 = vector.load %arg7[%c0_30, %c0_31] : memref<16x128xf32, #tpu.memory_space<vmem>>, vector<16x128xf32>
      tpu.vector_store %arg7[%c0_30, %c0_31], %46 {strides = array<i32>} : memref<16x128xf32, #tpu.memory_space<vmem>>, vector<16x128xf32>,
      %49 = arith.truncf %46 : vector<16x128xf32> to vector<16x128xbf16>
      %c0_32 = arith.constant 0 : index
      %c0_33 = arith.constant 0 : index
      %50 = vector.load %arg8[%c0_32, %c0_33] : memref<16x128xbf16, #tpu.memory_space<vmem>>, vector<16x128xbf16>
      tpu.vector_store %arg8[%c0_32, %c0_33], %49 {strides = array<i32>} : memref<16x128xbf16, #tpu.memory_space<vmem>>, vector<16x128xbf16>,
      %c0_34 = arith.constant 0 : index
      %51 = memref.load %arg2[%c0_34] : memref<5xf32, #tpu.memory_space<smem>>
      %52 = vector.broadcast %51 : f32 to vector<16x128xf32>
      %53 = arith.mulf %52, %46 : vector<16x128xf32>
      %c0_35 = arith.constant 0 : index
      %c0_36 = arith.constant 0 : index
      %54 = vector.load %arg5[%c0_35, %c0_36] : memref<16x128xf32, #tpu.memory_space<vmem>>, vector<16x128xf32>
      tpu.vector_store %arg5[%c0_35, %c0_36], %53 {strides = array<i32>} : memref<16x128xf32, #tpu.memory_space<vmem>>, vector<16x128xf32>,
    } else {
    }
    %c0 = arith.constant 0 : index
    %c0_2 = arith.constant 0 : index
    %5 = vector.load %arg4[%c0, %c0_2] : memref<256x128xbf16, #tpu.memory_space<vmem>>, vector<256x128xbf16>
    %c0_3 = arith.constant 0 : index
    %c0_4 = arith.constant 0 : index
    %6 = vector.load %arg8[%c0_3, %c0_4] : memref<16x128xbf16, #tpu.memory_space<vmem>>, vector<16x128xbf16>
    %cst = arith.constant dense<0.000000e+00> : vector<16x256xf32>
    %7 = tpu.matmul %6, %5, %cst {dimension_numbers = #tpu.dot_dimension_numbers<[1], [1], [0], [0], [0, 0, 1, 0], [], []>} : vector<16x128xbf16>, vector<256x128xbf16>, vector<16x256xf32> -> vector<16x256xf32>
    %8 = arith.truncf %7 : vector<16x256xf32> to vector<16x256xbf16>
    %cst_5 = arith.constant dense<0.000000e+00> : vector<16x128xf32>
    %9 = tpu.matmul %8, %5, %cst_5 {dimension_numbers = #tpu.dot_dimension_numbers<[1], [0], [0], [1], [0, 0, 1, 1], [], []>} : vector<16x256xbf16>, vector<256x128xbf16>, vector<16x128xf32> -> vector<16x128xf32>
    %c0_i32_6 = arith.constant 0 : i32
    %10 = arith.cmpi eq, %arg1, %c0_i32_6 : i32
    %11 = arith.extui %10 : i1 to i32
    %c0_i32_7 = arith.constant 0 : i32
    %12 = arith.cmpi ne, %11, %c0_i32_7 : i32
    scf.if %12 {
      %c0_26 = arith.constant 0 : index
      %c0_27 = arith.constant 0 : index
      %46 = vector.load %arg9[%c0_26, %c0_27] : memref<16x128xf32, #tpu.memory_space<vmem>>, vector<16x128xf32>
      tpu.vector_store %arg9[%c0_26, %c0_27], %9 {strides = array<i32>} : memref<16x128xf32, #tpu.memory_space<vmem>>, vector<16x128xf32>,
    } else {
    }
    %c0_i32_8 = arith.constant 0 : i32
    %13 = arith.cmpi ne, %arg1, %c0_i32_8 : i32
    %14 = arith.extui %13 : i1 to i32
    %c0_i32_9 = arith.constant 0 : i32
    %15 = arith.cmpi ne, %14, %c0_i32_9 : i32
    scf.if %15 {
      %c0_26 = arith.constant 0 : index
      %c0_27 = arith.constant 0 : index
      %46 = vector.load %arg9[%c0_26, %c0_27] : memref<16x128xf32, #tpu.memory_space<vmem>>, vector<16x128xf32>
      %47 = arith.addf %46, %9 : vector<16x128xf32>
      %c0_28 = arith.constant 0 : index
      %c0_29 = arith.constant 0 : index
      %48 = vector.load %arg9[%c0_28, %c0_29] : memref<16x128xf32, #tpu.memory_space<vmem>>, vector<16x128xf32>
      tpu.vector_store %arg9[%c0_28, %c0_29], %47 {strides = array<i32>} : memref<16x128xf32, #tpu.memory_space<vmem>>, vector<16x128xf32>,
    } else {
    }
    %c0_i32_10 = arith.constant 0 : i32
    %16 = arith.cmpi eq, %arg1, %c0_i32_10 : i32
    %c2_i32 = arith.constant 2 : i32
    %c0_i32_11 = arith.constant 0 : i32
    %17 = arith.cmpi eq, %c2_i32, %c0_i32_11 : i32
    %c1_i32 = arith.constant 1 : i32
    %18 = arith.select %17, %c1_i32, %c2_i32 : i32
    %19 = arith.remsi %arg0, %18 : i32
    %c0_i32_12 = arith.constant 0 : i32
    %20 = arith.cmpi ne, %19, %c0_i32_12 : i32
    %c0_i32_13 = arith.constant 0 : i32
    %21 = arith.cmpi slt, %19, %c0_i32_13 : i32
    %c0_i32_14 = arith.constant 0 : i32
    %22 = arith.cmpi slt, %18, %c0_i32_14 : i32
    %23 = arith.xori %21, %22 : i1
    %24 = arith.andi %23, %20 : i1
    %25 = arith.addi %19, %18 : i32
    %26 = arith.select %24, %25, %19 : i32
    %c0_i32_15 = arith.constant 0 : i32
    %27 = arith.cmpi eq, %26, %c0_i32_15 : i32
    %28 = arith.andi %16, %27 : i1
    %29 = arith.extui %28 : i1 to i32
    %c0_i32_16 = arith.constant 0 : i32
    %30 = arith.cmpi ne, %29, %c0_i32_16 : i32
    scf.if %30 {
      %c0_26 = arith.constant 0 : index
      %c0_27 = arith.constant 0 : index
      %46 = vector.load %arg6[%c0_26, %c0_27] : memref<16x128xf32, #tpu.memory_space<vmem>>, vector<16x128xf32>
      %c0_28 = arith.constant 0 : index
      %c0_29 = arith.constant 0 : index
      %47 = vector.load %arg9[%c0_28, %c0_29] : memref<16x128xf32, #tpu.memory_space<vmem>>, vector<16x128xf32>
      %cst_30 = arith.constant 2.000000e+00 : f32
      %48 = vector.broadcast %cst_30 : f32 to vector<16x128xf32>
      %49 = arith.mulf %48, %47 : vector<16x128xf32>
      %50 = arith.subf %46, %49 : vector<16x128xf32>
      %c0_i32_31 = arith.constant 0 : i32
      %51 = arith.cmpi eq, %arg0, %c0_i32_31 : i32
      %52 = arith.extui %51 : i1 to i32
      %53 = arith.sitofp %52 : i32 to f32
      %cst_32 = arith.constant 2.000000e+00 : f32
      %54 = arith.subf %cst_32, %53 : f32
      %55 = vector.broadcast %54 : f32 to vector<16x128xf32>
      %56 = arith.mulf %55, %50 : vector<16x128xf32>
      %cst_33 = arith.constant 1.000000e+00 : f32
      %57 = arith.subf %cst_33, %53 : f32
      %c0_34 = arith.constant 0 : index
      %c0_35 = arith.constant 0 : index
      %58 = vector.load %arg7[%c0_34, %c0_35] : memref<16x128xf32, #tpu.memory_space<vmem>>, vector<16x128xf32>
      %59 = vector.broadcast %57 : f32 to vector<16x128xf32>
      %60 = arith.mulf %59, %58 : vector<16x128xf32>
      %61 = arith.subf %56, %60 : vector<16x128xf32>
      %c0_36 = arith.constant 0 : index
      %c0_37 = arith.constant 0 : index
      %62 = vector.load %arg5[%c0_36, %c0_37] : memref<16x128xf32, #tpu.memory_space<vmem>>, vector<16x128xf32>
      %c1_i32_38 = arith.constant 1 : i32
      %63 = arith.addi %arg0, %c1_i32_38 : i32
      %64 = arith.index_cast %63 : i32 to index
      %65 = memref.load %arg2[%64] : memref<5xf32, #tpu.memory_space<smem>>
      %66 = vector.broadcast %65 : f32 to vector<16x128xf32>
      %67 = arith.mulf %66, %61 : vector<16x128xf32>
      %68 = arith.addf %62, %67 : vector<16x128xf32>
      %c0_39 = arith.constant 0 : index
      %c0_40 = arith.constant 0 : index
      %69 = vector.load %arg5[%c0_39, %c0_40] : memref<16x128xf32, #tpu.memory_space<vmem>>, vector<16x128xf32>
      tpu.vector_store %arg5[%c0_39, %c0_40], %68 {strides = array<i32>} : memref<16x128xf32, #tpu.memory_space<vmem>>, vector<16x128xf32>,
      %c1_i32_41 = arith.constant 1 : i32
      %70 = arith.addi %arg0, %c1_i32_41 : i32
      %c4_i32 = arith.constant 4 : i32
      %71 = arith.cmpi slt, %70, %c4_i32 : i32
      %72 = arith.extui %71 : i1 to i32
      %c0_i32_42 = arith.constant 0 : i32
      %73 = arith.cmpi ne, %72, %c0_i32_42 : i32
      scf.if %73 {
        %c0_43 = arith.constant 0 : index
        %c0_44 = arith.constant 0 : index
        %74 = vector.load %arg7[%c0_43, %c0_44] : memref<16x128xf32, #tpu.memory_space<vmem>>, vector<16x128xf32>
        tpu.vector_store %arg7[%c0_43, %c0_44], %61 {strides = array<i32>} : memref<16x128xf32, #tpu.memory_space<vmem>>, vector<16x128xf32>,
        %75 = arith.truncf %61 : vector<16x128xf32> to vector<16x128xbf16>
        %c0_45 = arith.constant 0 : index
        %c0_46 = arith.constant 0 : index
        %76 = vector.load %arg8[%c0_45, %c0_46] : memref<16x128xbf16, #tpu.memory_space<vmem>>, vector<16x128xbf16>
        tpu.vector_store %arg8[%c0_45, %c0_46], %75 {strides = array<i32>} : memref<16x128xbf16, #tpu.memory_space<vmem>>, vector<16x128xbf16>,
      } else {
      }
    } else {
    }
    %c0_i32_17 = arith.constant 0 : i32
    %31 = arith.cmpi eq, %arg1, %c0_i32_17 : i32
    %c2_i32_18 = arith.constant 2 : i32
    %c0_i32_19 = arith.constant 0 : i32
    %32 = arith.cmpi eq, %c2_i32_18, %c0_i32_19 : i32
    %c1_i32_20 = arith.constant 1 : i32
    %33 = arith.select %32, %c1_i32_20, %c2_i32_18 : i32
    %34 = arith.remsi %arg0, %33 : i32
    %c0_i32_21 = arith.constant 0 : i32
    %35 = arith.cmpi ne, %34, %c0_i32_21 : i32
    %c0_i32_22 = arith.constant 0 : i32
    %36 = arith.cmpi slt, %34, %c0_i32_22 : i32
    %c0_i32_23 = arith.constant 0 : i32
    %37 = arith.cmpi slt, %33, %c0_i32_23 : i32
    %38 = arith.xori %36, %37 : i1
    %39 = arith.andi %38, %35 : i1
    %40 = arith.addi %34, %33 : i32
    %41 = arith.select %39, %40, %34 : i32
    %c1_i32_24 = arith.constant 1 : i32
    %42 = arith.cmpi eq, %41, %c1_i32_24 : i32
    %43 = arith.andi %31, %42 : i1
    %44 = arith.extui %43 : i1 to i32
    %c0_i32_25 = arith.constant 0 : i32
    %45 = arith.cmpi ne, %44, %c0_i32_25 : i32
    scf.if %45 {
      %c0_26 = arith.constant 0 : index
      %c0_27 = arith.constant 0 : index
      %46 = vector.load %arg7[%c0_26, %c0_27] : memref<16x128xf32, #tpu.memory_space<vmem>>, vector<16x128xf32>
      %c0_28 = arith.constant 0 : index
      %c0_29 = arith.constant 0 : index
      %47 = vector.load %arg9[%c0_28, %c0_29] : memref<16x128xf32, #tpu.memory_space<vmem>>, vector<16x128xf32>
      %cst_30 = arith.constant 2.000000e+00 : f32
      %48 = vector.broadcast %cst_30 : f32 to vector<16x128xf32>
      %49 = arith.mulf %48, %47 : vector<16x128xf32>
      %50 = arith.subf %46, %49 : vector<16x128xf32>
      %c0_i32_31 = arith.constant 0 : i32
      %51 = arith.cmpi eq, %arg0, %c0_i32_31 : i32
      %52 = arith.extui %51 : i1 to i32
      %53 = arith.sitofp %52 : i32 to f32
      %cst_32 = arith.constant 2.000000e+00 : f32
      %54 = arith.subf %cst_32, %53 : f32
      %55 = vector.broadcast %54 : f32 to vector<16x128xf32>
      %56 = arith.mulf %55, %50 : vector<16x128xf32>
      %cst_33 = arith.constant 1.000000e+00 : f32
      %57 = arith.subf %cst_33, %53 : f32
      %c0_34 = arith.constant 0 : index
      %c0_35 = arith.constant 0 : index
      %58 = vector.load %arg6[%c0_34, %c0_35] : memref<16x128xf32, #tpu.memory_space<vmem>>, vector<16x128xf32>
      %59 = vector.broadcast %57 : f32 to vector<16x128xf32>
      %60 = arith.mulf %59, %58 : vector<16x128xf32>
      %61 = arith.subf %56, %60 : vector<16x128xf32>
      %c0_36 = arith.constant 0 : index
      %c0_37 = arith.constant 0 : index
      %62 = vector.load %arg5[%c0_36, %c0_37] : memref<16x128xf32, #tpu.memory_space<vmem>>, vector<16x128xf32>
      %c1_i32_38 = arith.constant 1 : i32
      %63 = arith.addi %arg0, %c1_i32_38 : i32
      %64 = arith.index_cast %63 : i32 to index
      %65 = memref.load %arg2[%64] : memref<5xf32, #tpu.memory_space<smem>>
      %66 = vector.broadcast %65 : f32 to vector<16x128xf32>
      %67 = arith.mulf %66, %61 : vector<16x128xf32>
      %68 = arith.addf %62, %67 : vector<16x128xf32>
      %c0_39 = arith.constant 0 : index
      %c0_40 = arith.constant 0 : index
      %69 = vector.load %arg5[%c0_39, %c0_40] : memref<16x128xf32, #tpu.memory_space<vmem>>, vector<16x128xf32>
      tpu.vector_store %arg5[%c0_39, %c0_40], %68 {strides = array<i32>} : memref<16x128xf32, #tpu.memory_space<vmem>>, vector<16x128xf32>,
      %c1_i32_41 = arith.constant 1 : i32
      %70 = arith.addi %arg0, %c1_i32_41 : i32
      %c4_i32 = arith.constant 4 : i32
      %71 = arith.cmpi slt, %70, %c4_i32 : i32
      %72 = arith.extui %71 : i1 to i32
      %c0_i32_42 = arith.constant 0 : i32
      %73 = arith.cmpi ne, %72, %c0_i32_42 : i32
      scf.if %73 {
        %c0_43 = arith.constant 0 : index
        %c0_44 = arith.constant 0 : index
        %74 = vector.load %arg6[%c0_43, %c0_44] : memref<16x128xf32, #tpu.memory_space<vmem>>, vector<16x128xf32>
        tpu.vector_store %arg6[%c0_43, %c0_44], %61 {strides = array<i32>} : memref<16x128xf32, #tpu.memory_space<vmem>>, vector<16x128xf32>,
        %75 = arith.truncf %61 : vector<16x128xf32> to vector<16x128xbf16>
        %c0_45 = arith.constant 0 : index
        %c0_46 = arith.constant 0 : index
        %76 = vector.load %arg8[%c0_45, %c0_46] : memref<16x128xbf16, #tpu.memory_space<vmem>>, vector<16x128xbf16>
        tpu.vector_store %arg8[%c0_45, %c0_46], %75 {strides = array<i32>} : memref<16x128xbf16, #tpu.memory_space<vmem>>, vector<16x128xbf16>,
      } else {
      }
    } else {
    }
    return
  }
  func.func @transform_0(%arg0: i32, %arg1: i32) -> i32 {
    %c0_i32 = arith.constant 0 : i32
    %c0_i32_0 = arith.constant 0 : i32
    return %c0_i32 : i32
  }
  func.func @transform_1(%arg0: i32, %arg1: i32) -> (i32, i32) {
    %c0_i32 = arith.constant 0 : i32
    %c0_i32_0 = arith.constant 0 : i32
    %c0_i32_1 = arith.constant 0 : i32
    return %c0_i32, %c0_i32_0 : i32, i32
  }
  func.func @transform_2(%arg0: i32, %arg1: i32) -> (i32, i32) {
    %c0_i32 = arith.constant 0 : i32
    %c0_i32_0 = arith.constant 0 : i32
    %c0_i32_1 = arith.constant 0 : i32
    return %c0_i32, %c0_i32_0 : i32, i32
  }
  func.func @transform_3(%arg0: i32, %arg1: i32) -> (i32, i32) {
    %c0_i32 = arith.constant 0 : i32
    %c0_i32_0 = arith.constant 0 : i32
    %c0_i32_1 = arith.constant 0 : i32
    return %c0_i32, %c0_i32_0 : i32, i32
  }
}

</mosaic_0001>

<bundles_post_ra>
// kernel: tpu_custom_call.1
= control target key start
LH: loop header
LB: loop body
LE: loop exit
PB: predicated region body
PF: predicated region fallthrough
CT: control target
= control target key end

     0   :  { %8 = vsyncpa [#allocation9], 0  ;;  %s1080_s0 = inlined_call_operand.hbm [shape: f32[5], index: 0, kind: input, shape index: {}]   ;;  %s1081_s1 = inlined_call_operand.hbm [shape: f32[16,128], index: 1, kind: input, shape index: {}]   ;;  %s1082_s2 = inlined_call_operand.hbm [shape: bf16[256,128], index: 2, kind: input, shape index: {}]   ;;  %s1083_s3 = inlined_call_operand.hbm [shape: f32[16,128], index: 3, kind: output, shape index: {}]  }
   0x1   :  { %9 = vsyncpa [#allocation7], 0 }
   0x2   :  { %10 = vsyncpa [#allocation12], 0 }
   0x3   :  { %11 = vsyncpa [#allocation8], 0  ;;  %s982_s12 = smov 0   ;;  %s984_s13 = smov 0  }
   0x4   :  { %s986_s14 = smov 0  }
   0x5 LB: > { %s617_s15 = sadd.s32 4294967295, %s950_s14   ;;  %s29_s16 = sadd.s32 1, %s946_s13  ;;  %s950_s14 = sphi %s986_s14, %s17_s14   ;;  %s946_s13 = sphi %s984_s13, %s1088_s13   ;;  %s942_s12 = sphi %s982_s12, %s1087_s12  }
   0x6   : > { %p31_p0 = scmp.ge.s32.totalorder %s29_s16, 4  ;;  %p618_p1 = scmp.ge.s32.totalorder %s950_s14, 1 }
   0x7   : > { %p118_p2 = scmp.lt.s32.totalorder %s950_s14, 5  ;;  %p1009_p4 = scmp.eq.s32.totalorder %s617_s15, 0 }
   0x8   : > { %s1090_s16 = smov (%p31_p0, %s29_s16), 0  ;;  %s130_s21 = sshll.u32 %s1080_s0, 4  ;;  %s131_s21 = int_to_ptr.hbm [resolvable:$true] %s130_s21 }
   0x9   : > { %p1003_p3 = pnand %p618_p1, %p118_p2  ;;  %s139_s24 = sshll.u32 %s1081_s1, 4  ;;  %s140_s24 = int_to_ptr.hbm [resolvable:$true] %s139_s24 }
   0xa   : > { %s952_s26 = smov [#allocation10]   ;;  %s953_s28 = smov [#allocation6]  }
   0xb   : > { %p757_p5 = pneg %p1003_p3  ;;  %s141_s27 = sshll.u32 %s952_s26, 4  ;;  %s142_s27 = int_to_ptr.vmem [resolvable:$true] %s141_s27 }
   0xc   : > { %s153_s4 = sshll.u32 %s1082_s2, 4  ;;  %s954_s5 = smov 128   ;;  %s154_s4 = int_to_ptr.hbm [resolvable:$true] %s153_s4 }
   0xd   : > { %p1023_p6 = pnand %p1009_p4, %p757_p5  ;;  %s955_s6 = smov 8  }
   0xe   : > { %s956_s7 = smov [#allocation11]   ;;  %s957_s9 = smov 64  }
   0xf   : > { %760 = dma.hbm_to_smem (!%p1023_p6), %s131_s21, 16, %s953_s28, [#allocation9]  }
  0x10   : > { %763 = dma.hbm_to_vmem [thread:$0]  (!%p1023_p6), %s140_s24, 256, %s142_s27, [#allocation7], %s954_s5, %s954_s5, %s955_s6  }
  0x11   : > { %s155_s8 = sshll.u32 %s956_s7, 4  ;;  %s958_s10 = smov 4   ;;  %s156_s8 = int_to_ptr.vmem [resolvable:$true] %s155_s8 }
  0x12   : > { %766 = dma.hbm_to_vmem [thread:$0]  (!%p1023_p6), %s154_s4, 2048, %s156_s8, [#allocation12], %s957_s9, %s957_s9, %s958_s10  }
  0x13   : > { %171 = sbr.rel (%p1003_p3) target bundleno = 444 (0x1bc), region = 32 }
  0x18   : > { %925 = dma.done.wait (%p1009_p4), [#allocation9], 16  }
  0x19   : > { %927 = vsyncadd (%p1009_p4), [#allocation9], 4294967280 }
  0x1a   : > { %929 = dma.done.wait (%p1009_p4), [#allocation7], 256  }
  0x1b   : > { %931 = vsyncadd (%p1009_p4), [#allocation7], 4294967040 }
  0x1c   : > { %933 = dma.done.wait (%p1009_p4), [#allocation12], 2048  }
  0x1d   : > { %935 = vsyncadd (%p1009_p4), [#allocation12], 4294965248 }
  0x1e   : > { %188 = sfence }
  0x1f   : > { %p197_p7 = scmp.eq.s32.totalorder %s942_s12, 0 }
  0x20   : > { %v203_v0 = vld [vmem:[#allocation10] sm:$0xff] (%p197_p7)  ;;  %v204_v1 = vld [vmem:[#allocation10 + $0x8] sm:$0xff] (%p197_p7)  ;;  %s213_s11 = sld [smem:[#allocation6]] (%p197_p7) }
  0x21   : > { %202 = sbr.rel (!%p197_p7) target bundleno = 43 (0x2b), region = 48  ;;  %205 = vst [vmem:[#allocation2] sm:$0xff] (%p197_p7), %v203_v0  ;;  %v729_v2 = vpack.c.bf16 (%p197_p7), %v204_v1, %v203_v0 }
  0x22   : > { %207 = vst [vmem:[#allocation3 + $0x8] sm:$0xff] (%p197_p7), %v203_v0 }
  0x23   : > { %206 = vst [vmem:[#allocation2 + $0x8] sm:$0xff] (%p197_p7), %v204_v1 }
  0x24   : > { %208 = vst [vmem:[#allocation3] sm:$0xff] (%p197_p7), %v204_v1 }
  0x25   : > { %730 = vst [vmem:[#allocation4] sm:$0xff] (%p197_p7), %v729_v2  }
  0x26   : > { %v214_v3 = vstv %s213_s11 }
  0x27   : > { %v215_v4 = vmul.f32 %v214_v3, %v203_v0  ;;  %v216_v5 = vmul.f32 %v214_v3, %v204_v1 }
  0x29   : > { %217 = vst [vmem:[#allocation13] sm:$0xff] %v215_v4 }
  0x2a   : > { %218 = vst [vmem:[#allocation13 + $0x8] sm:$0xff] %v216_v5 }
  0x2b PF: > { %v714_v6 = vld [vmem:[#allocation11 + $0x38] sm:$0xff]  ;;  %v713_v8 = vld [vmem:[#allocation11 + $0x30] sm:$0xff]  ;;  %v712_v10 = vld [vmem:[#allocation11 + $0x28] sm:$0xff]  ;;  %s429_s17 = ssub.s32 0, %s942_s12  ;;  %p428_p8 = scmp.lt.s32.totalorder %s942_s12, 0 }
  0x2c   : > { %v722_v7 = vld [vmem:[#allocation11 + $0x78] sm:$0xff]  ;;  %355 = vmatpush.bf16.xpose.msra.mxu0 %v714_v6  ;;  %385 = vmatpush.bf16.msra.mxu2 %v714_v6  ;;  %v721_v9 = vld [vmem:[#allocation11 + $0x70] sm:$0xff]  ;;  %v720_v11 = vld [vmem:[#allocation11 + $0x68] sm:$0xff]  ;;  %s695_s18 = smin.u32 %s942_s12, %s429_s17 }
  0x2d   : > { %369 = vmatpush.bf16.xpose.msra.mxu1 %v722_v7  ;;  %399 = vmatpush.bf16.msra.mxu3 %v722_v7  ;;  %v711_v12 = vld [vmem:[#allocation11 + $0x20] sm:$0xff]  ;;  %v710_v14 = vld [vmem:[#allocation11 + $0x18] sm:$0xff]  ;;  %v709_v16 = vld [vmem:[#allocation11 + $0x10] sm:$0xff]  ;;  %s431_s19 = sand.u32 1, %s695_s18  }
  0x2e   : > { %v719_v13 = vld [vmem:[#allocation11 + $0x60] sm:$0xff]  ;;  %v718_v15 = vld [vmem:[#allocation11 + $0x58] sm:$0xff]  ;;  %v717_v17 = vld [vmem:[#allocation11 + $0x50] sm:$0xff]  ;;  %s432_s20 = ssub.s32 0, %s431_s19 }
  0x2f   : > { %v708_v18 = vld [vmem:[#allocation11 + $0x8] sm:$0xff]  ;;  %v707_v20 = vld [vmem:[#allocation11] sm:$0xff]  ;;  %s1092_s20 = smov (!%p428_p8, %s432_s20), %s431_s19 }
  0x30   : > { %386 = vmatpush.bf16.msra.mxu2 %v713_v8  ;;  %v716_v19 = vld [vmem:[#allocation11 + $0x48] sm:$0xff]  ;;  %v715_v21 = vld [vmem:[#allocation11 + $0x40] sm:$0xff]  ;;  %p697_p9 = scmp.lt.s32.totalorder %s1092_s20, 0  ;;  %s438_s21 = sadd.s32 2, %s1092_s20 }
  0x31   : > { %400 = vmatpush.bf16.msra.mxu3 %v721_v9  ;;  %v723_v22 = vld [vmem:[#allocation4] sm:$0xff] }
  0x32   : > { %s1094_s21 = smov (!%p697_p9, %s438_s21), %s1092_s20 }
  0x33   : > { %p440_p10 = scmp.eq.s32.totalorder %s1094_s21, 0 }
  0x34   : > { %356 = vmatpush.bf16.xpose.msra.mxu0 %v713_v8  ;;  %387 = vmatpush.bf16.msra.mxu2 %v712_v10  ;;  %v445_v35 = vld [vmem:[#allocation2] sm:$0xff] (%p440_p10)  ;;  %s469_s23 = sadd.s32 (%p440_p10), 1, %s942_s12  ;;  %v446_v38 = vld [vmem:[#allocation2 + $0x8] sm:$0xff] (%p440_p10)  ;;  %v460_v43 = vld [vmem:[#allocation3 + $0x8] sm:$0xff] (%p440_p10) }
  0x35   : > { %370 = vmatpush.bf16.xpose.msra.mxu1 %v721_v9  ;;  %401 = vmatpush.bf16.msra.mxu3 %v720_v11  ;;  %s470_s25 = sld [smem:[#allocation6 + %s469_s23]] (%p440_p10)  ;;  %v461_v44 = vld [vmem:[#allocation3] sm:$0xff] (%p440_p10)  ;;  %v467_v54 = vld [vmem:[#allocation13] sm:$0xff] (%p440_p10)  ;;  %p699_p11 = scmp.ge.s32.totalorder (%p440_p10), %s469_s23, 4 }
  0x36   : > { %v468_v55 = vld [vmem:[#allocation13 + $0x8] sm:$0xff] (%p440_p10) }
  0x38   : > { %388 = vmatpush.bf16.msra.mxu2 %v711_v12 }
  0x39   : > { %402 = vmatpush.bf16.msra.mxu3 %v719_v13 }
  0x3b   : > { %v471_v51 = vstv (%p440_p10), %s470_s25 }
  0x3c   : > { %357 = vmatpush.bf16.xpose.msra.mxu0 %v712_v10  ;;  %389 = vmatpush.bf16.msra.mxu2 %v710_v14 }
  0x3d   : > { %371 = vmatpush.bf16.xpose.msra.mxu1 %v720_v11  ;;  %403 = vmatpush.bf16.msra.mxu3 %v718_v15 }
  0x40   : > { %390 = vmatpush.bf16.msra.mxu2 %v709_v16 }
  0x41   : > { %404 = vmatpush.bf16.msra.mxu3 %v717_v17 }
  0x44   : > { %358 = vmatpush.bf16.xpose.msra.mxu0 %v711_v12  ;;  %391 = vmatpush.bf16.msra.mxu2 %v708_v18 }
  0x45   : > { %372 = vmatpush.bf16.xpose.msra.mxu1 %v719_v13  ;;  %405 = vmatpush.bf16.msra.mxu3 %v716_v19 }
  0x48   : > { %392 = vmatpush.bf16.msra.mxu2 %v707_v20 }
  0x49   : > { %406 = vmatpush.bf16.msra.mxu3 %v715_v21 }
  0x4c   : > { %359 = vmatpush.bf16.xpose.msra.mxu0 %v710_v14 }
  0x4d   : > { %373 = vmatpush.bf16.xpose.msra.mxu1 %v718_v15 }
  0x54   : > { %360 = vmatpush.bf16.xpose.msra.mxu0 %v709_v16 }
  0x55   : > { %374 = vmatpush.bf16.xpose.msra.mxu1 %v717_v17 }
  0x5c   : > { %361 = vmatpush.bf16.xpose.msra.mxu0 %v708_v18 }
  0x5d   : > { %375 = vmatpush.bf16.xpose.msra.mxu1 %v716_v19 }
  0x64   : > { %362 = vmatpush.bf16.xpose.msra.mxu0 %v707_v20 }
  0x65   : > { %376 = vmatpush.bf16.xpose.msra.mxu1 %v715_v21 }
  0x6b   : > { %363 = vmatmul.bf16.vlgmr.msra.gmra.mxu0 %v723_v22 }
  0x6c   : > { %377 = vmatmul.bf16.vlgmr.msra.gmra.mxu1 %v723_v22 }
  0xe8   : > { %v364_v23 = vpop.f32.mrf.mxu0 }
  0xe9   : > { %v378_v24 = vpop.f32.mrf.mxu1 }
  0xf0   : > { %v366_v25 = vpop.f32.mrf.mxu0 }
  0xf1   : > { %v380_v26 = vpop.f32.mrf.mxu1  ;;  %v383_v27 = vpack.c.bf16 %v366_v25, %v364_v23 }
  0xf2   : > { %v384_v28 = vpack.c.bf16 %v380_v26, %v378_v24 }
  0xf3   : > { %393 = vmatmul.bf16.vlgmr.msra.gmra.mxu2 %v383_v27 }
  0xf4   : > { %407 = vmatmul.bf16.vlgmr.msra.gmra.mxu3 %v384_v28 }
 0x176   : > { %v394_v29 = vpop.f32.mrf.mxu2 }
 0x177   : > { %v408_v30 = vpop.f32.mrf.mxu3 }
 0x178   : > { %v409_v31 = vadd.f32 %v408_v30, %v394_v29 }
 0x17a   : > { %416 = vst [vmem:[#allocation5 + $0x8] sm:$0xff] %v409_v31 }
 0x17e   : > { %v396_v32 = vpop.f32.mrf.mxu2  ;;  %444 = sbr.rel (!%p440_p10) target bundleno = 410 (0x19a), region = 60 }
 0x17f   : > { %v410_v33 = vpop.f32.mrf.mxu3 }
 0x180   : > { %v411_v34 = vadd.f32 %v410_v33, %v396_v32 }
 0x181   : > { %v447_v36 = vld [vmem:[#allocation5 + $0x8] sm:$0xff] (%p440_p10) }
 0x182   : > { %417 = vst [vmem:[#allocation5] sm:$0xff] %v411_v34  ;;  %v449_v37 = vmul.f32 (%p440_p10), 2.0, %v447_v36 }
 0x183   : > { %s453_s22 = scalar_select %p197_p7, 1, 0 }
 0x184   : > { %v451_v41 = vsub.f32 %v445_v35, %v449_v37 }
 0x185   : > { %s454_s24 = scvt.s32.f32 %s453_s22 }
 0x187   : > { %s455_s26 = ssub.f32 2.0, %s454_s24 }
 0x188   : > { %s459_s27 = ssub.f32 1.0, %s454_s24 }
 0x189   : > { %v448_v39 = vld [vmem:[#allocation5] sm:$0xff]  ;;  %v456_v45 = vstv %s455_s26 }
 0x18a   : > { %v450_v40 = vmul.f32 2.0, %v448_v39  ;;  %v457_v46 = vmul.f32 %v456_v45, %v451_v41  ;;  %v462_v47 = vstv %s459_s27 }
 0x18b   : > { %v463_v49 = vmul.f32 %v462_v47, %v460_v43  ;;  %v464_v50 = vmul.f32 %v462_v47, %v461_v44 }
 0x18c   : > { %v452_v42 = vsub.f32 %v446_v38, %v450_v40 }
 0x18d   : > { %v465_v52 = vsub.f32 %v457_v46, %v463_v49 }
 0x18e   : > { %v458_v48 = vmul.f32 %v456_v45, %v452_v42 }
 0x18f   : > { %v472_v56 = vmul.f32 %v471_v51, %v465_v52 }
 0x190   : > { %v466_v53 = vsub.f32 %v458_v48, %v464_v50 }
 0x191   : > { %v474_v58 = vadd.f32 %v472_v56, %v467_v54 }
 0x192   : > { %v473_v57 = vmul.f32 %v471_v51, %v466_v53  ;;  %481 = sbr.rel (%p699_p11) target bundleno = 410 (0x19a), region = 64 }
 0x193   : > { %476 = vst [vmem:[#allocation13] sm:$0xff] %v474_v58 }
 0x194   : > { %v475_v59 = vadd.f32 %v473_v57, %v468_v55 }
 0x196   : > { %477 = vst [vmem:[#allocation13 + $0x8] sm:$0xff] %v475_v59 }
 0x197   : > { %482 = vst [vmem:[#allocation3 + $0x8] sm:$0xff] %v465_v52  ;;  %v734_v60 = vpack.c.bf16 %v466_v53, %v465_v52 }
 0x198   : > { %483 = vst [vmem:[#allocation3] sm:$0xff] %v466_v53 }
 0x199   : > { %735 = vst [vmem:[#allocation4] sm:$0xff] %v734_v60  }
 0x19a PF: > { %p488_p12 = scmp.eq.s32.totalorder %s1094_s21, 1 }
 0x19b   : > { %v495_v62 = vld [vmem:[#allocation5 + $0x8] sm:$0xff] (%p488_p12)  ;;  %s517_s29 = sadd.s32 (%p488_p12), 1, %s942_s12  ;;  %v508_v5 = vld [vmem:[#allocation2] sm:$0xff] (%p488_p12)  ;;  %v509_v6 = vld [vmem:[#allocation2 + $0x8] sm:$0xff] (%p488_p12) }
 0x19c   : > { %492 = sbr.rel (!%p488_p12) target bundleno = 438 (0x1b6), region = 68  ;;  %v497_v63 = vmul.f32 (%p488_p12), 2.0, %v495_v62  ;;  %s518_s4 = sld [smem:[#allocation6 + %s517_s29]] (%p488_p12) }
 0x19d   : > { %v515_v16 = vld [vmem:[#allocation13] sm:$0xff] (%p488_p12)  ;;  %p701_p13 = scmp.ge.s32.totalorder (%p488_p12), %s517_s29, 4 }
 0x19f   : > { %v494_v0 = vld [vmem:[#allocation3] sm:$0xff] (%p488_p12) }
 0x1a0   : > { %v496_v1 = vld [vmem:[#allocation5] sm:$0xff] (%p488_p12)  ;;  %v516_v17 = vld [vmem:[#allocation13 + $0x8] sm:$0xff] (%p488_p12) }
 0x1a1   : > { %v493_v61 = vld [vmem:[#allocation3 + $0x8] sm:$0xff]  ;;  %s501_s28 = scalar_select %p197_p7, 1, 0  ;;  %v498_v2 = vmul.f32 2.0, %v496_v1 }
 0x1a2   : > { %v499_v3 = vsub.f32 %v493_v61, %v497_v63  ;;  %v519_v13 = vstv %s518_s4 }
 0x1a3   : > { %s502_s30 = scvt.s32.f32 %s501_s28  ;;  %v500_v4 = vsub.f32 %v494_v0, %v498_v2 }
 0x1a5   : > { %s503_s5 = ssub.f32 2.0, %s502_s30 }
 0x1a6   : > { %s507_s6 = ssub.f32 1.0, %s502_s30 }
 0x1a7   : > { %v504_v7 = vstv %s503_s5 }
 0x1a8   : > { %v505_v8 = vmul.f32 %v504_v7, %v499_v3  ;;  %v510_v9 = vstv %s507_s6  ;;  %v506_v10 = vmul.f32 %v504_v7, %v500_v4 }
 0x1a9   : > { %v511_v11 = vmul.f32 %v510_v9, %v508_v5  ;;  %v512_v12 = vmul.f32 %v510_v9, %v509_v6 }
 0x1ab   : > { %v513_v14 = vsub.f32 %v505_v8, %v511_v11  ;;  %v514_v15 = vsub.f32 %v506_v10, %v512_v12 }
 0x1ad   : > { %v520_v18 = vmul.f32 %v519_v13, %v513_v14  ;;  %v521_v19 = vmul.f32 %v519_v13, %v514_v15 }
 0x1ae   : > { %529 = sbr.rel (%p701_p13) target bundleno = 438 (0x1b6), region = 72 }
 0x1af   : > { %v522_v20 = vadd.f32 %v520_v18, %v515_v16  ;;  %v523_v21 = vadd.f32 %v521_v19, %v516_v17 }
 0x1b1   : > { %524 = vst [vmem:[#allocation13] sm:$0xff] %v522_v20 }
 0x1b2   : > { %525 = vst [vmem:[#allocation13 + $0x8] sm:$0xff] %v523_v21 }
 0x1b3   : > { %530 = vst [vmem:[#allocation2] sm:$0xff] %v513_v14  ;;  %v739_v22 = vpack.c.bf16 %v514_v15, %v513_v14 }
 0x1b4   : > { %531 = vst [vmem:[#allocation2 + $0x8] sm:$0xff] %v514_v15 }
 0x1b5   : > { %740 = vst [vmem:[#allocation4] sm:$0xff] %v739_v22  }
 0x1b6 PF: > { %p773_p0 = scmp.eq.s32.totalorder %s617_s15, 3  ;;  %s543_s8 = sshll.u32 %s1083_s3, 4  ;;  %s544_s8 = int_to_ptr.hbm [resolvable:$true] %s543_s8 }
 0x1b7   : > { %s959_s9 = smov [#allocation13]   ;;  %s960_s11 = smov 128  }
 0x1b8   : > { %s541_s10 = sshll.u32 %s959_s9, 4  ;;  %s961_s17 = smov 8   ;;  %s542_s10 = int_to_ptr.vmem [resolvable:$true] %s541_s10 }
 0x1b9   : > { %754 = dma.vmem_to_hbm [thread:$0]  (%p773_p0), %s542_s10, 256, %s544_s8, [#allocation8], %s960_s11, %s960_s11, %s961_s17  }
 0x1ba   : > { %937 = dma.done.wait (%p773_p0), [#allocation8], 256  }
 0x1bb   : > { %939 = vsyncadd (%p773_p0), [#allocation8], 4294967040 }
 0x1bc PF: > { %s17_s14 = sadd.s32 1, %s950_s14   ;;  %s1087_s12 = smov %s946_s13 }
 0x1bd   : > { %p14_p1 = scmp.ge.s32.totalorder %s17_s14, 6   ;;  %s1088_s13 = smov %s1090_s16 }
 0x1bf   :  { %16 = sbr.rel (!%p14_p1) target bundleno = 5 (0x5), region = 98 }
 0x1c4   :  { %560 = vsyncpa [#allocation7], 1 }
 0x1c5   :  { %562 = vsyncpa [#allocation7 + $0x1], 1 }
 0x1c6   :  { %563 = vsyncpa [#allocation12], 1 }
 0x1c7   :  { %564 = vsyncpa [#allocation8], 1 }
 0x1c8   :  { %566 = vsyncpa [#allocation8 + $0x1], 1 }
 0x1c9   :  { %567 = vsyncpa [#allocation9], 1 }
 0x1ca   :  { %569 = vsyncpa [#allocation9 + $0x1], 1 }

</bundles_post_ra>
